<compile_context>
chip_gen: v7x
topology: tpu7x:2x2x1
jax: 0.10.0
libtpu: 0.0.40
codegen_flags: <defaults>
</compile_context>

<pallas_src>
import functools
import math

import jax
import jax.numpy as jnp
from jax.experimental import pallas as pl
from jax.experimental.pallas import tpu as pltpu


def _round_up(x, m):
    return (x + m - 1) // m * m


def _lane_width(d):
    # smallest lane extent that is a multiple of both d (whole points per row)
    # and 128 (full lane occupancy): 128 for d=2, 384 for d=3.
    return (128 * d) // math.gcd(128, d)


def _target_block_bytes():
    """Per-generation real-payload target per block (review guidance)."""
    try:
        kind = jax.devices()[0].device_kind.lower()
    except Exception:
        kind = ""
    if "v5" in kind:
        return 1 << 20          # ~1 MiB / buffer on v5e (820 GB/s HBM)
    if "7" in kind:
        return 4 << 20          # ~4 MiB / buffer on v7x (3.2 TB/s, 64 MiB VMEM)
    return 2 << 20              # ~2 MiB / buffer on v6e and anything else


# ----------------------------------------------------------------------------
# Pallas kernel: lane-dense affine transform of a (TR, L) tile of packed points
# ----------------------------------------------------------------------------
def _affine_kernel(coef_ref, x_ref, o_ref, *, d, lane):
    """coef_ref: VMEM (1, 2d, lane); x_ref/o_ref: VMEM (1, TR, lane) f32.

    coef row layout: rows 0..2d-2 hold the coefficient for lane-shift
    s = row - (d-1) (i.e. multiplied with roll(x, s)); row 2d-1 is the
    per-lane translation.
    """
    x = x_ref[0]                                  # (TR, lane)
    c = coef_ref[0]                               # (2d, lane)
    # translation + zero-shift term
    acc = c[2 * d - 1:2 * d, :] + c[d - 1:d, :] * x
    for s in range(1, d):
        # roll(x, s)[l]        == x[l - s]   (neighbour coords, lower lanes)
        acc = acc + c[d - 1 + s:d + s, :] * pltpu.roll(x, shift=s, axis=1)
        # roll(x, lane - s)[l] == x[l + s]   (neighbour coords, higher lanes)
        acc = acc + c[d - 1 - s:d - s, :] * pltpu.roll(x, shift=lane - s, axis=1)
    o_ref[0] = acc


# ----------------------------------------------------------------------------
# Per-lane coefficient construction (tiny, plain JAX, once per call)
# ----------------------------------------------------------------------------
def _build_lane_coefs(trafo, d, lane):
    """trafo: (B, d+1, d+1) f32 -> (B, 2d, lane) f32 lane-coefficient table."""
    j = jnp.arange(lane) % d                       # output coordinate per lane
    rows = []
    for s in range(-(d - 1), d):                   # coefficient for roll(x, s)
        m = j - s                                  # source coordinate index
        valid = (m >= 0) & (m < d)
        mc = jnp.clip(m, 0, d - 1)
        c = trafo[:, j, mc]                        # (B, lane)
        rows.append(jnp.where(valid[None, :], c, 0.0))
    rows.append(trafo[:, j, d])                    # translation column
    return jnp.stack(rows, axis=1).astype(jnp.float32)   # (B, 2d, lane)


# ----------------------------------------------------------------------------
# Wrapper: lane-dense reshape + tiled pallas_call
# ----------------------------------------------------------------------------
def _apply_trafo(trafo_matrix, shapes, block_bytes=None):
    """trafo_matrix: (B, D+1, D+1) f32, shapes: (B, N, D) f32 -> (B, N, D)."""
    b, n, d = shapes.shape
    lane = _lane_width(d)
    q = lane // d                                  # points per lane row

    n_pad = _round_up(n, q)
    if n_pad != n:
        # TODO(synk): unaligned N (N % 64/128 != 0) costs one extra pad+slice
        # HBM pass; the aligned path below is completely copy-free.
        shapes = jnp.pad(shapes, ((0, 0), (0, n_pad - n), (0, 0)))
    rows = n_pad // q
    x = shapes.reshape(b, rows, lane)              # free, contiguous reshape

    coefs = _build_lane_coefs(trafo_matrix, d, lane)   # (B, 2d, lane)

    # Row-tile sizing: ~block_bytes of *real* payload per buffer.
    if block_bytes is None:
        block_bytes = _target_block_bytes()
    tr = max(8, (block_bytes // (lane * 4)) // 8 * 8)
    if rows <= tr:
        tr = rows                                  # full-extent block (always legal)
    nt = pl.cdiv(rows, tr)                         # partial last tile handled by Pallas

    out = pl.pallas_call(
        functools.partial(_affine_kernel, d=d, lane=lane),
        out_shape=jax.ShapeDtypeStruct((b, rows, lane), jnp.float32),
        grid_spec=pltpu.PrefetchScalarGridSpec(
            num_scalar_prefetch=0,
            grid=(b, nt),
            in_specs=[
                # per-batch coefficient table (tiny; re-fetched only when b changes)
                pl.BlockSpec((1, 2 * d, lane), lambda i, t: (i, 0, 0)),
                # lane-dense point tile
                pl.BlockSpec((1, tr, lane), lambda i, t: (i, t, 0)),
            ],
            out_specs=pl.BlockSpec((1, tr, lane), lambda i, t: (i, t, 0)),
        ),
        compiler_params=pltpu.CompilerParams(
            dimension_semantics=("parallel", "parallel")),
        cost_estimate=pl.CostEstimate(
            flops=2 * b * n_pad * d * (d + 1),
            transcendentals=0,
            bytes_accessed=2 * b * rows * lane * 4 + b * 2 * d * lane * 4),
    )(coefs, x)

    out = out.reshape(b, n_pad, d)                 # free reshape back
    if n_pad != n:
        out = out[:, :n, :]
    return out


# ----------------------------------------------------------------------------
# Matrix assembly (parameter setup, plain JAX) -- mirrors _ensemble_*_matrix
# ----------------------------------------------------------------------------
def _ensemble_2d_matrix(rot, trans, scale):
    # rot: (B,1), trans: (B,2), scale: (B,1)
    s = scale[:, 0]
    r = rot[:, 0]
    c, sn = jnp.cos(r), jnp.sin(r)
    zero = jnp.zeros_like(s)
    one = jnp.ones_like(s)
    row0 = jnp.stack([s * c, s * sn, trans[:, 0]], axis=-1)
    row1 = jnp.stack([-s * sn, s * c, trans[:, 1]], axis=-1)
    row2 = jnp.stack([zero, zero, one], axis=-1)
    return jnp.stack([row0, row1, row2], axis=1)          # (B, 3, 3)


def _ensemble_3d_matrix(rot, trans, scale):
    # rot: (B,3) [yaw, pitch, roll], trans: (B,3), scale: (B,3) (isotropic [:,0])
    s = scale[:, 0]
    yaw, pitch, roll = rot[:, 0], rot[:, 1], rot[:, 2]
    cy, sy = jnp.cos(yaw), jnp.sin(yaw)
    cp, sp = jnp.cos(pitch), jnp.sin(pitch)
    cr, sr = jnp.cos(roll), jnp.sin(roll)
    zero = jnp.zeros_like(s)
    one = jnp.ones_like(s)
    row0 = jnp.stack([s * (cp * cr), s * (cp * sr), -s * sp, trans[:, 0]], axis=-1)
    row1 = jnp.stack([s * (sy * sp * cr - cy * sr),
                      s * (sy * sp * sr + cy * cr),
                      s * (sy * cp), trans[:, 1]], axis=-1)
    row2 = jnp.stack([s * (cy * sp * cr + sy * sr),
                      s * (cy * sp * sr - sy * cr),
                      s * (cy * cp), trans[:, 2]], axis=-1)
    row3 = jnp.stack([zero, zero, zero, one], axis=-1)
    return jnp.stack([row0, row1, row2, row3], axis=1)    # (B, 4, 4)


# ----------------------------------------------------------------------------
# Forward pass (wrapper == HomogeneousTransformationLayer.forward)
# ----------------------------------------------------------------------------
@functools.partial(jax.jit, static_argnames=("n_dims", "block_bytes"))
def homogeneous_transformation_layer(shapes, params, *, n_dims, block_bytes=None):
    """shapes: (B, N, n_dims) f32, params: (B, P, 1) or (B, P) f32."""
    assert shapes.shape[-1] == n_dims, "Layer for other dimensionality specified"
    b = shapes.shape[0]
    params = params.reshape(b, -1).astype(jnp.float32)
    shapes = shapes.astype(jnp.float32)

    if n_dims == 2:
        scale, rot, trans = params[:, 0:1], params[:, 1:2], params[:, 2:4]
        trafo = _ensemble_2d_matrix(rot, trans, scale)
    elif n_dims == 3:
        scale, rot, trans = params[:, 0:3], params[:, 3:6], params[:, 6:9]
        trafo = _ensemble_3d_matrix(rot, trans, scale)
    else:
        raise NotImplementedError(n_dims)

    return _apply_trafo(trafo, shapes, block_bytes=block_bytes)


# ----------------------------------------------------------------------------
# Pure-JAX reference (direct transcription of the torch forward)
# ----------------------------------------------------------------------------
def _reference(shapes, params, n_dims):
    params = params.reshape(params.shape[0], -1).astype(jnp.float32)
    shapes = shapes.astype(jnp.float32)
    if n_dims == 2:
        trafo = _ensemble_2d_matrix(params[:, 1:2], params[:, 2:4], params[:, 0:1])
    else:
        trafo = _ensemble_3d_matrix(params[:, 3:6], params[:, 6:9], params[:, 0:3])
    ones = jnp.ones(shapes.shape[:-1] + (1,), dtype=shapes.dtype)
    homogen = jnp.concatenate([shapes, ones], axis=-1)             # (B, N, D+1)
    out = jnp.einsum("bnk,bjk->bnj", homogen, trafo,
                     precision=jax.lax.Precision.HIGHEST)          # bmm with M^T
    return out[..., :-1]


if __name__ == "__main__":
    key = jax.random.PRNGKey(0)
    ks = jax.random.split(key, 8)
    B = 2

    # ---- n_dims = 2, small unaligned N (pads to one 64-point lane row) ----
    shapes_2d = jax.random.normal(ks[0], (B, 16, 2), dtype=jnp.float32)
    params_2d = 0.5 * jax.random.normal(ks[1], (B, 4, 1), dtype=jnp.float32)
    out_2d = jax.block_until_ready(
        homogeneous_transformation_layer(shapes_2d, params_2d, n_dims=2))
    ref_2d = _reference(shapes_2d, params_2d, 2)
    assert out_2d.shape == (B, 16, 2)
    assert jnp.allclose(out_2d, ref_2d, atol=1e-5, rtol=1e-5)

    # ---- n_dims = 3, small unaligned N ----
    shapes_3d = jax.random.normal(ks[2], (B, 16, 3), dtype=jnp.float32)
    params_3d = 0.5 * jax.random.normal(ks[3], (B, 9, 1), dtype=jnp.float32)
    out_3d = jax.block_until_ready(
        homogeneous_transformation_layer(shapes_3d, params_3d, n_dims=3))
    ref_3d = _reference(shapes_3d, params_3d, 3)
    assert out_3d.shape == (B, 16, 3)
    assert jnp.allclose(out_3d, ref_3d, atol=1e-5, rtol=1e-5)

    # ---- n_dims = 3, aligned N: copy-free lane-dense fast path ----
    shapes_al = jax.random.normal(ks[4], (B, 512, 3), dtype=jnp.float32)
    params_al = 0.5 * jax.random.normal(ks[5], (B, 9, 1), dtype=jnp.float32)
    out_al = jax.block_until_ready(
        homogeneous_transformation_layer(shapes_al, params_al, n_dims=3))
    ref_al = _reference(shapes_al, params_al, 3)
    assert out_al.shape == (B, 512, 3)
    assert jnp.allclose(out_al, ref_al, atol=1e-5, rtol=1e-5)

    # ---- n_dims = 3, forced small tile: multi-tile grid + partial last tile ----
    shapes_big = jax.random.normal(ks[6], (B, 2176, 3), dtype=jnp.float32)
    params_big = 0.5 * jax.random.normal(ks[7], (B, 9, 1), dtype=jnp.float32)
    out_big = jax.block_until_ready(
        homogeneous_transformation_layer(shapes_big, params_big, n_dims=3,
                                         block_bytes=16 * 1024))
    ref_big = _reference(shapes_big, params_big, 3)
    assert out_big.shape == (B, 2176, 3)
    assert jnp.allclose(out_big, ref_big, atol=1e-5, rtol=1e-5)

    print("KERNEL_OK")
</pallas_src>

<mosaic_0001>
module attributes {stable_mosaic.version = 11 : i64} {
  func.func @_affine_kernel(%arg0: i32, %arg1: i32, %arg2: memref<1x4x128xf32, #tpu.memory_space<vmem>>, %arg3: memref<1x1x128xf32, #tpu.memory_space<vmem>>, %arg4: memref<1x1x128xf32, #tpu.memory_space<vmem>>) attributes {dimension_semantics = [#tpu.dimension_semantics<parallel>, #tpu.dimension_semantics<parallel>], iteration_bounds = array<i64: 2, 1>, scalar_prefetch = 0 : i64, scratch_operands = 0 : i64, tpu.core_type = #tpu.core_type<tc>, window_params = [{transform_indices = @transform_0, window_bounds = array<i64: 1, 4, 128>}, {transform_indices = @transform_1, window_bounds = array<i64: 1, 1, 128>}, {transform_indices = @transform_2, window_bounds = array<i64: 1, 1, 128>}]} {
    %c0 = arith.constant 0 : index
    %c0_0 = arith.constant 0 : index
    %c0_1 = arith.constant 0 : index
    %0 = vector.load %arg3[%c0, %c0_0, %c0_1] : memref<1x1x128xf32, #tpu.memory_space<vmem>>, vector<1x1x128xf32>
    %1 = vector.shape_cast %0 : vector<1x1x128xf32> to vector<1x128xf32>
    %c0_2 = arith.constant 0 : index
    %c0_3 = arith.constant 0 : index
    %c0_4 = arith.constant 0 : index
    %2 = vector.load %arg2[%c0_2, %c0_3, %c0_4] : memref<1x4x128xf32, #tpu.memory_space<vmem>>, vector<1x4x128xf32>
    %3 = vector.shape_cast %2 : vector<1x4x128xf32> to vector<4x128xf32>
    %4 = vector.extract_strided_slice %3 {offsets = [3, 0], sizes = [1, 128], strides = [1, 1]} : vector<4x128xf32> to vector<1x128xf32>
    %5 = vector.extract_strided_slice %3 {offsets = [1, 0], sizes = [1, 128], strides = [1, 1]} : vector<4x128xf32> to vector<1x128xf32>
    %6 = arith.mulf %5, %1 : vector<1x128xf32>
    %7 = arith.addf %4, %6 : vector<1x128xf32>
    %8 = vector.extract_strided_slice %3 {offsets = [2, 0], sizes = [1, 128], strides = [1, 1]} : vector<4x128xf32> to vector<1x128xf32>
    %c1_i32 = arith.constant 1 : i32
    %9 = tpu.dynamic_rotate %1 by %c1_i32 dim 1 : vector<1x128xf32>, i32 -> vector<1x128xf32>
    %10 = arith.mulf %8, %9 : vector<1x128xf32>
    %11 = arith.addf %7, %10 : vector<1x128xf32>
    %12 = vector.extract_strided_slice %3 {offsets = [0, 0], sizes = [1, 128], strides = [1, 1]} : vector<4x128xf32> to vector<1x128xf32>
    %c127_i32 = arith.constant 127 : i32
    %13 = tpu.dynamic_rotate %1 by %c127_i32 dim 1 : vector<1x128xf32>, i32 -> vector<1x128xf32>
    %14 = arith.mulf %12, %13 : vector<1x128xf32>
    %15 = arith.addf %11, %14 : vector<1x128xf32>
    %c0_5 = arith.constant 0 : index
    %c0_6 = arith.constant 0 : index
    %c0_7 = arith.constant 0 : index
    %16 = vector.load %arg4[%c0_5, %c0_6, %c0_7] : memref<1x1x128xf32, #tpu.memory_space<vmem>>, vector<1x1x128xf32>
    %17 = vector.shape_cast %16 : vector<1x1x128xf32> to vector<1x128xf32>
    %18 = vector.shape_cast %15 : vector<1x128xf32> to vector<1x1x128xf32>
    tpu.vector_store %arg4[%c0_5, %c0_6, %c0_7], %18 {strides = array<i32>} : memref<1x1x128xf32, #tpu.memory_space<vmem>>, vector<1x1x128xf32>,
    return
  }
  func.func @transform_0(%arg0: i32, %arg1: i32) -> (i32, i32, i32) {
    %c0_i32 = arith.constant 0 : i32
    %c0_i32_0 = arith.constant 0 : i32
    %c0_i32_1 = arith.constant 0 : i32
    return %arg0, %c0_i32, %c0_i32_0 : i32, i32, i32
  }
  func.func @transform_1(%arg0: i32, %arg1: i32) -> (i32, i32, i32) {
    %c0_i32 = arith.constant 0 : i32
    %c0_i32_0 = arith.constant 0 : i32
    return %arg0, %arg1, %c0_i32 : i32, i32, i32
  }
  func.func @transform_2(%arg0: i32, %arg1: i32) -> (i32, i32, i32) {
    %c0_i32 = arith.constant 0 : i32
    %c0_i32_0 = arith.constant 0 : i32
    return %arg0, %arg1, %c0_i32 : i32, i32, i32
  }
}

</mosaic_0001>

<bundles_post_ra>
// kernel: homogeneous_transformation_layer.1
= control target key start
LH: loop header
LB: loop body
LE: loop exit
PB: predicated region body
PF: predicated region fallthrough
CT: control target
= control target key end

     0   :  { %s365_s9 = smov 0   ;;  %s367_s10 = smov 0   ;;  %s401_s0 = inlined_call_operand.vmem [shape: f32[2,4,128], index: 0, kind: input, shape index: {}]   ;;  %s402_s1 = inlined_call_operand.vmem [shape: f32[2,1,128], index: 1, kind: input, shape index: {}]   ;;  %s403_s2 = inlined_call_operand.vmem [shape: f32[2,1,128], index: 2, kind: output, shape index: {}]  }
   0x1   :  { %s369_s11 = smov 0  }
   0x2 LB: > { %s24_s12 = sadd.s32 1, %s342_s10  ;;  %p294_p0 = scmp.ge.s32.totalorder %s346_s11, 1  ;;  %s346_s11 = sphi %s369_s11, %s12_s11   ;;  %s342_s10 = sphi %s367_s10, %s405_s10   ;;  %s338_s9 = sphi %s365_s9, %s404_s9  }
   0x3   : > { %p26_p1 = scmp.ge.s32.totalorder %s24_s12, 2  ;;  %p138_p2 = scmp.lt.s32.totalorder %s346_s11, 3 }
   0x5   : > { %s407_s12 = smov (%p26_p1, %s24_s12), 0  ;;  %p139_p3 = pnand %p294_p0, %p138_p2 }
   0x6   : > { %p166_p4 = scmp.lt.s32.totalorder (!%p139_p3), %s338_s9, 1  ;;  %v185_v0 = vlaneseq (!%p139_p3)  ;;  %s348_s20 = smov (!%p139_p3), 1  }
   0x7   : > { %142 = sbr.rel (%p139_p3) target bundleno = 143 (0x8f), region = 28  ;;  %s349_s21 = smov (!%p139_p3), 127  }
   0x8   : > { %v186_v1 = vshrl.u32 (!%p139_p3), %v185_v0, 7 }
   0xa   : > { %v187_v2 = vsub.s32 (!%p139_p3), 0, %v186_v1 }
   0xe   : > { %s409_s9 = smov (!%p166_p4, %s338_s9), 1 }
   0xf   : > { %s175_s15 = scalar_lea.vmem %s402_s1, %s409_s9  ;;  %s295_s16 = sshll.u32 %s409_s9, 2 }
  0x10   : > { %v182_v3 = vld [vmem:[%s175_s15] sm:$0x1]  ;;  %s169_s19 = scalar_lea.vmem %s401_s0, %s295_s16  ;;  %s181_s24 = scalar_lea.vmem %s403_s2, %s409_s9 }
  0x11   : > { %195 = vrot.lane.b32.xlu0 %v182_v3, %s348_s20  ;;  %v188_v4 = vrot.slane %v182_v3, %v187_v2  ;;  %v183_v5 = vld [vmem:[%s169_s19] sm:$0xf] }
  0x13   : > { %v190_v6 = vmul.f32 %v188_v4, %v183_v5 }
  0x15   : > { %205 = vrot.lane.b32.xlu0 %v182_v3, %s349_s21  ;;  %v192_v7 = vrot.slane %v190_v6, 6 }
  0x17   : > { %v194_v8 = vadd.f32 %v192_v7, %v183_v5 }
  0x83   : > { %v196_v9 = vpop.permute.xlu0 %195 }
  0x84   : > { %v198_v10 = vrot.slane %v196_v9, 6 }
  0x86   : > { %v200_v11 = vmul.f32 %v198_v10, %v183_v5 }
  0x87   : > { %v206_v12 = vpop.permute.xlu0 %205 }
  0x88   : > { %v202_v13 = vrot.slane %v200_v11, 7  ;;  %v207_v14 = vmul.f32 %v206_v12, %v183_v5 }
  0x8a   : > { %v204_v15 = vadd.f32 %v202_v13, %v194_v8  ;;  %v209_v16 = vrot.slane %v207_v14, 5 }
  0x8c   : > { %v211_v17 = vadd.f32 %v209_v16, %v204_v15 }
  0x8e   : > { %212 = vst [vmem:[%s181_s24 - $0x3] sm:$0x8] %v211_v17 }
  0x8f PF: > { %s12_s11 = sadd.s32 1, %s346_s11   ;;  %s404_s9 = smov %s342_s10 }
  0x90   : > { %p9_p5 = scmp.ge.s32.totalorder %s12_s11, 4   ;;  %s405_s10 = smov %s407_s12 }
  0x92   :  { %11 = sbr.rel (!%p9_p5) target bundleno = 2 (0x2), region = 61 }

</bundles_post_ra>
